<compile_context>
chip_gen: v5e
topology: v5e:2x2
jax: 0.10.0
libtpu: 0.0.40
codegen_flags: <defaults>
</compile_context>

<pallas_src>
import jax
import jax.numpy as jnp
from jax import lax
from jax.experimental import pallas as pl
from jax.experimental.pallas import tpu as pltpu

EPS = 1e-5          # torch.nn.BatchNorm2d default eps (training-mode batch stats)
NEG_SLOPE = 0.2     # MyLeakyReLU negative_slope


def _make_kernel(cr, wo, ncols):
    """Fused conv1+BN1+ReLU -> convT+BN2+LeakyReLU on lane-dense (C, N*Ho*Wo) tiles."""

    def kernel(p1_ref, w1_ref, g1_ref, b1_ref, w2_ref, g2_ref, b2_ref, m_ref, o_ref):
        # ---- Conv2d(k=4,s=2,p=1): one MXU matmul on pre-im2col'd patches
        y1 = jnp.dot(w1_ref[...], p1_ref[...],
                     preferred_element_type=jnp.float32)            # (Cl, N*Ho*Wo)

        # ---- BN1 (training-mode batch stats over N,H,W), two-pass variance, + ReLU
        mean1 = jnp.mean(y1, axis=1, keepdims=True)                 # (Cl, 1)
        cen1 = y1 - mean1
        var1 = jnp.mean(cen1 * cen1, axis=1, keepdims=True)
        scale1 = g1_ref[...] * lax.rsqrt(var1 + EPS)                # EUP
        y1 = jnp.maximum(cen1 * scale1 + b1_ref[...], 0.0)          # (Cl, N*Ho*Wo)

        # ---- ConvTranspose2d(k=4,s=2,p=1) as ONE matmul over a 3x3 window:
        # taps are XLU lane-rotations of the lane-dense activation + boundary masks
        # (no physically padded scratch, no per-batch loop).
        taps = []
        for a in range(3):
            for b in range(3):
                d = (a - 1) * wo + (b - 1)          # flat column offset of tap (a, b)
                t = y1 if d == 0 else pltpu.roll(y1, shift=(-d) % ncols, axis=1)
                r = a * 3 + b
                taps.append(t * m_ref[r:r + 1, :])
        p2 = jnp.concatenate(taps, axis=0)                          # (9*Cl, N*Ho*Wo)
        z = jnp.dot(w2_ref[...], p2,
                    preferred_element_type=jnp.float32)             # (4*Cr, N*Ho*Wo)

        # ---- BN2: per-channel stats over the 4 parity rows x all columns (two-pass)
        inv_cnt2 = 1.0 / (4.0 * ncols)
        s_rows = jnp.sum(z, axis=1, keepdims=True)                  # (4*Cr, 1)
        mean2 = (s_rows[0:cr] + s_rows[cr:2 * cr]
                 + s_rows[2 * cr:3 * cr] + s_rows[3 * cr:4 * cr]) * inv_cnt2   # (Cr,1)
        mean2f = jnp.concatenate([mean2] * 4, axis=0)               # (4*Cr, 1)
        cen2 = z - mean2f
        q_rows = jnp.sum(cen2 * cen2, axis=1, keepdims=True)
        var2 = (q_rows[0:cr] + q_rows[cr:2 * cr]
                + q_rows[2 * cr:3 * cr] + q_rows[3 * cr:4 * cr]) * inv_cnt2
        scale2 = g2_ref[...] * lax.rsqrt(var2 + EPS)                # (Cr, 1)
        scale2f = jnp.concatenate([scale2] * 4, axis=0)             # (4*Cr, 1)
        bias2f = jnp.concatenate([b2_ref[...]] * 4, axis=0)
        z = cen2 * scale2f + bias2f

        # TODO(synk): Dropout(p=0.5) on the decoder branch is a training-time
        # stochastic op; treated as the deterministic inference no-op here.
        o_ref[...] = jnp.where(z >= 0.0, z, NEG_SLOPE * z)          # LeakyReLU(0.2)

    return kernel


@jax.jit
def unet_block(x, w1, g1, b1, w2, g2, b2):
    """UnetBlock (lower=None) forward.

    x : (N, Cin, H, W)  NCHW (PyTorch convention)
    w1: (Cl, Cin, 4, 4) Conv2d weight (no bias)
    w2: (Cl, Cr, 4, 4)  ConvTranspose2d weight (no bias)
    g1,b1: (Cl,)  BN1 affine;  g2,b2: (Cr,)  BN2 affine
    """
    n, cin, h, w = x.shape
    cl = w1.shape[0]
    cr = w2.shape[1]
    ho, wo = h // 2, w // 2
    nc = n * ho * wo                       # fused lane axis (128 at the test shape)
    f32 = jnp.float32
    x = x.astype(f32)

    # --- full im2col of the stride-2 / pad-1 4x4 conv -> (16*Cin, N*Ho*Wo), lane-dense
    xp = jnp.pad(x, ((0, 0), (0, 0), (1, 1), (1, 1)))
    cols = [xp[:, :, p:p + 2 * ho:2, q:q + 2 * wo:2]        # (N, Cin, Ho, Wo)
            for p in range(4) for q in range(4)]
    patches1 = (jnp.stack(cols, axis=0)                     # (16, N, Cin, Ho, Wo)
                  .transpose(0, 2, 1, 3, 4)                 # (16, Cin, N, Ho, Wo)
                  .reshape(16 * cin, nc))

    # conv1 weight -> (Cl, 16*Cin); columns ordered (p, q, ci) to match patches1 rows
    w1m = w1.astype(f32).transpose(0, 2, 3, 1).reshape(cl, 16 * cin)

    # --- ConvTranspose2d(k=4,s=2,p=1) == 4 parity sub-convs over a 3x3 window of the
    # (conceptually) zero-padded activation; pack all four into one (4*Cr, 9*Cl)
    # weight.  Rows ordered (dy, dx, co); cols ordered (a, b, ci).
    tap_map = {0: {0: 3, 1: 1}, 1: {1: 2, 2: 0}}   # parity -> {window offset: kernel tap}
    w2f = w2.astype(f32)
    w2e = jnp.zeros((2, 2, cr, 3, 3, cl), f32)
    for dy, amap in tap_map.items():
        for a, kh in amap.items():
            for dx, bmap in tap_map.items():
                for b, kw in bmap.items():
                    w2e = w2e.at[dy, dx, :, a, b, :].set(w2f[:, :, kh, kw].T)
    w2m = w2e.reshape(4 * cr, 9 * cl)

    # --- boundary masks for the 9 in-kernel roll-taps (columns ordered (n, oy, ox));
    # zero exactly where the rolled activation would wrap across an image edge.
    oy = jnp.arange(ho)
    ox = jnp.arange(wo)
    mrows = []
    for a in range(3):
        for b in range(3):
            my = (oy + (a - 1) >= 0) & (oy + (a - 1) < ho)          # (Ho,)
            mx = (ox + (b - 1) >= 0) & (ox + (b - 1) < wo)          # (Wo,)
            m = (my[:, None] & mx[None, :]).astype(f32).reshape(ho * wo)
            mrows.append(jnp.tile(m, (n,)))                         # (N*Ho*Wo,)
    mask9 = jnp.stack(mrows, axis=0)                                # (9, N*Ho*Wo)

    kernel = _make_kernel(cr, wo, nc)

    flops = 2 * nc * (16 * cin) * cl + 2 * nc * (9 * cl) * (4 * cr)
    bytes_accessed = 4 * (patches1.size + w1m.size + w2m.size + mask9.size
                          + 2 * cl + 2 * cr + 4 * cr * nc)
    cost = pl.CostEstimate(flops=flops, transcendentals=cl + cr,
                           bytes_accessed=bytes_accessed)

    out = pl.pallas_call(
        kernel,
        out_shape=jax.ShapeDtypeStruct((4 * cr, nc), f32),
        grid=(1,),   # all batches processed at once on lane-dense operands
        in_specs=[
            pl.BlockSpec((16 * cin, nc), lambda i: (0, 0)),   # im2col patches
            pl.BlockSpec((cl, 16 * cin), lambda i: (0, 0)),   # conv1 weight
            pl.BlockSpec((cl, 1), lambda i: (0, 0)),          # BN1 gamma
            pl.BlockSpec((cl, 1), lambda i: (0, 0)),          # BN1 beta
            pl.BlockSpec((4 * cr, 9 * cl), lambda i: (0, 0)), # packed convT weight
            pl.BlockSpec((cr, 1), lambda i: (0, 0)),          # BN2 gamma
            pl.BlockSpec((cr, 1), lambda i: (0, 0)),          # BN2 beta
            pl.BlockSpec((9, nc), lambda i: (0, 0)),          # tap boundary masks
        ],
        out_specs=pl.BlockSpec((4 * cr, nc), lambda i: (0, 0)),
        compiler_params=pltpu.CompilerParams(
            # BatchNorm couples every batch element; everything is resident in one
            # invocation, so a single "arbitrary" step is the natural structure.
            dimension_semantics=("arbitrary",),
            vmem_limit_bytes=32 * 1024 * 1024,   # tiny footprint; safe on v7x too
        ),
        cost_estimate=cost,
    )(patches1, w1m,
      g1.reshape(cl, 1).astype(f32), b1.reshape(cl, 1).astype(f32),
      w2m,
      g2.reshape(cr, 1).astype(f32), b2.reshape(cr, 1).astype(f32),
      mask9)

    # depth-to-space: rows (dy, dx, co), cols (n, oy, ox)  ->  NCHW
    return (out.reshape(2, 2, cr, n, ho, wo)
               .transpose(3, 2, 4, 0, 5, 1)
               .reshape(n, cr, h, w))


def _bn_ref(y, g, b):
    m = jnp.mean(y, axis=(0, 2, 3), keepdims=True)
    v = jnp.mean((y - m) ** 2, axis=(0, 2, 3), keepdims=True)  # biased, like torch
    return (y - m) * lax.rsqrt(v + EPS) * g.reshape(1, -1, 1, 1) + b.reshape(1, -1, 1, 1)


def unet_block_ref(x, w1, g1, b1, w2, g2, b2):
    """Pure-JAX reference with identical forward semantics (for the self-test)."""
    x = x.astype(jnp.float32)
    y = lax.conv_general_dilated(
        x, w1.astype(jnp.float32), window_strides=(2, 2),
        padding=((1, 1), (1, 1)),
        dimension_numbers=("NCHW", "OIHW", "NCHW"))
    y = jnp.maximum(_bn_ref(y, g1, b1), 0.0)

    # ConvTranspose2d(k=4,s=2,p=1) == lhs-dilated conv with the flipped/transposed kernel
    wt = jnp.flip(w2.astype(jnp.float32), axis=(2, 3)).transpose(1, 0, 2, 3)
    z = lax.conv_general_dilated(
        y, wt, window_strides=(1, 1), padding=((2, 2), (2, 2)),
        lhs_dilation=(2, 2),
        dimension_numbers=("NCHW", "OIHW", "NCHW"))
    z = _bn_ref(z, g2, b2)
    return jnp.where(z >= 0.0, z, NEG_SLOPE * z)


if __name__ == "__main__":
    key = jax.random.PRNGKey(0)
    kx, k1, k2, kg1, kb1, kg2, kb2 = jax.random.split(key, 7)

    # UnetBlock(in_channels=4, left_filters=8, right_filters=4, lower=None)
    N, CIN, H, W = 2, 4, 16, 16
    CL, CR = 8, 4

    x = jax.random.normal(kx, (N, CIN, H, W), jnp.float32)

    bound1 = 1.0 / (CIN * 16) ** 0.5
    w1 = jax.random.uniform(k1, (CL, CIN, 4, 4), jnp.float32, -bound1, bound1)
    bound2 = 1.0 / (CL * 16) ** 0.5
    w2 = jax.random.uniform(k2, (CL, CR, 4, 4), jnp.float32, -bound2, bound2)

    g1 = 1.0 + 0.1 * jax.random.normal(kg1, (CL,), jnp.float32)
    b1 = 0.1 * jax.random.normal(kb1, (CL,), jnp.float32)
    g2 = 1.0 + 0.1 * jax.random.normal(kg2, (CR,), jnp.float32)
    b2 = 0.1 * jax.random.normal(kb2, (CR,), jnp.float32)

    out = unet_block(x, w1, g1, b1, w2, g2, b2)
    jax.block_until_ready(out)
    assert out.shape == (N, CR, H, W), out.shape

    ref = unet_block_ref(x, w1, g1, b1, w2, g2, b2)
    max_err = float(jnp.max(jnp.abs(out - ref)))
    assert jnp.allclose(out, ref, atol=1e-3, rtol=1e-3), max_err

    print("KERNEL_OK")
</pallas_src>

<mosaic_0001>
module attributes {stable_mosaic.version = 11 : i64} {
  func.func @kernel(%arg0: i32, %arg1: memref<64x128xf32, #tpu.memory_space<vmem>>, %arg2: memref<8x64xf32, #tpu.memory_space<vmem>>, %arg3: memref<8x1xf32, #tpu.memory_space<vmem>>, %arg4: memref<8x1xf32, #tpu.memory_space<vmem>>, %arg5: memref<16x72xf32, #tpu.memory_space<vmem>>, %arg6: memref<4x1xf32, #tpu.memory_space<vmem>>, %arg7: memref<4x1xf32, #tpu.memory_space<vmem>>, %arg8: memref<9x128xf32, #tpu.memory_space<vmem>>, %arg9: memref<16x128xf32, #tpu.memory_space<vmem>>) attributes {dimension_semantics = [#tpu.dimension_semantics<arbitrary>], iteration_bounds = array<i64: 1>, scalar_prefetch = 0 : i64, scratch_operands = 0 : i64, tpu.core_type = #tpu.core_type<tc>, window_params = [{pipeline_mode = #tpu.pipeline_mode<synchronous>, transform_indices = @transform_0, window_bounds = array<i64: 64, 128>}, {pipeline_mode = #tpu.pipeline_mode<synchronous>, transform_indices = @transform_1, window_bounds = array<i64: 8, 64>}, {pipeline_mode = #tpu.pipeline_mode<synchronous>, transform_indices = @transform_2, window_bounds = array<i64: 8, 1>}, {pipeline_mode = #tpu.pipeline_mode<synchronous>, transform_indices = @transform_3, window_bounds = array<i64: 8, 1>}, {pipeline_mode = #tpu.pipeline_mode<synchronous>, transform_indices = @transform_4, window_bounds = array<i64: 16, 72>}, {pipeline_mode = #tpu.pipeline_mode<synchronous>, transform_indices = @transform_5, window_bounds = array<i64: 4, 1>}, {pipeline_mode = #tpu.pipeline_mode<synchronous>, transform_indices = @transform_6, window_bounds = array<i64: 4, 1>}, {pipeline_mode = #tpu.pipeline_mode<synchronous>, transform_indices = @transform_7, window_bounds = array<i64: 9, 128>}, {pipeline_mode = #tpu.pipeline_mode<synchronous>, transform_indices = @transform_8, window_bounds = array<i64: 16, 128>}]} {
    %c0 = arith.constant 0 : index
    %c0_0 = arith.constant 0 : index
    %0 = vector.load %arg2[%c0, %c0_0] : memref<8x64xf32, #tpu.memory_space<vmem>>, vector<8x64xf32>
    %c0_1 = arith.constant 0 : index
    %c0_2 = arith.constant 0 : index
    %1 = vector.load %arg1[%c0_1, %c0_2] : memref<64x128xf32, #tpu.memory_space<vmem>>, vector<64x128xf32>
    %cst = arith.constant dense<0.000000e+00> : vector<8x128xf32>
    %2 = tpu.matmul %0, %1, %cst {dimension_numbers = #tpu.dot_dimension_numbers<[1], [0], [0], [1], [0, 0, 1, 1], [], []>} : vector<8x64xf32>, vector<64x128xf32>, vector<8x128xf32> -> vector<8x128xf32>
    %cst_3 = arith.constant dense<0.000000e+00> : vector<8xf32>
    %3 = vector.multi_reduction <add>, %2, %cst_3 [1] : vector<8x128xf32> to vector<8xf32>
    %4 = vector.shape_cast %3 : vector<8xf32> to vector<8x1xf32>
    %cst_4 = arith.constant 1.280000e+02 : f32
    %5 = vector.broadcast %cst_4 : f32 to vector<8x1xf32>
    %6 = arith.divf %4, %5 : vector<8x1xf32>
    %7 = vector.broadcast %6 : vector<8x1xf32> to vector<8x128xf32>
    %8 = arith.subf %2, %7 : vector<8x128xf32>
    %9 = arith.mulf %8, %8 : vector<8x128xf32>
    %cst_5 = arith.constant dense<0.000000e+00> : vector<8xf32>
    %10 = vector.multi_reduction <add>, %9, %cst_5 [1] : vector<8x128xf32> to vector<8xf32>
    %11 = vector.shape_cast %10 : vector<8xf32> to vector<8x1xf32>
    %cst_6 = arith.constant 1.280000e+02 : f32
    %12 = vector.broadcast %cst_6 : f32 to vector<8x1xf32>
    %13 = arith.divf %11, %12 : vector<8x1xf32>
    %c0_7 = arith.constant 0 : index
    %c0_8 = arith.constant 0 : index
    %14 = vector.load %arg3[%c0_7, %c0_8] : memref<8x1xf32, #tpu.memory_space<vmem>>, vector<8x1xf32>
    %cst_9 = arith.constant 9.99999974E-6 : f32
    %15 = vector.broadcast %cst_9 : f32 to vector<8x1xf32>
    %16 = arith.addf %13, %15 : vector<8x1xf32>
    %17 = math.rsqrt %16 : vector<8x1xf32>
    %18 = arith.mulf %14, %17 : vector<8x1xf32>
    %19 = vector.broadcast %18 : vector<8x1xf32> to vector<8x128xf32>
    %20 = arith.mulf %8, %19 : vector<8x128xf32>
    %c0_10 = arith.constant 0 : index
    %c0_11 = arith.constant 0 : index
    %21 = vector.load %arg4[%c0_10, %c0_11] : memref<8x1xf32, #tpu.memory_space<vmem>>, vector<8x1xf32>
    %22 = vector.broadcast %21 : vector<8x1xf32> to vector<8x128xf32>
    %23 = arith.addf %20, %22 : vector<8x128xf32>
    %cst_12 = arith.constant 0.000000e+00 : f32
    %24 = vector.broadcast %cst_12 : f32 to vector<8x128xf32>
    %25 = arith.maximumf %23, %24 : vector<8x128xf32>
    %c9_i32 = arith.constant 9 : i32
    %26 = tpu.dynamic_rotate %25 by %c9_i32 dim 1 : vector<8x128xf32>, i32 -> vector<8x128xf32>
    %c0_13 = arith.constant 0 : index
    %c0_14 = arith.constant 0 : index
    %27 = vector.load %arg8[%c0_13, %c0_14] : memref<9x128xf32, #tpu.memory_space<vmem>>, vector<1x128xf32>
    %28 = vector.broadcast %27 : vector<1x128xf32> to vector<8x128xf32>
    %29 = arith.mulf %26, %28 : vector<8x128xf32>
    %c8_i32 = arith.constant 8 : i32
    %30 = tpu.dynamic_rotate %25 by %c8_i32 dim 1 : vector<8x128xf32>, i32 -> vector<8x128xf32>
    %c1 = arith.constant 1 : index
    %c0_15 = arith.constant 0 : index
    %31 = vector.load %arg8[%c1, %c0_15] : memref<9x128xf32, #tpu.memory_space<vmem>>, vector<1x128xf32>
    %32 = vector.broadcast %31 : vector<1x128xf32> to vector<8x128xf32>
    %33 = arith.mulf %30, %32 : vector<8x128xf32>
    %c7_i32 = arith.constant 7 : i32
    %34 = tpu.dynamic_rotate %25 by %c7_i32 dim 1 : vector<8x128xf32>, i32 -> vector<8x128xf32>
    %c2 = arith.constant 2 : index
    %c0_16 = arith.constant 0 : index
    %35 = vector.load %arg8[%c2, %c0_16] : memref<9x128xf32, #tpu.memory_space<vmem>>, vector<1x128xf32>
    %36 = vector.broadcast %35 : vector<1x128xf32> to vector<8x128xf32>
    %37 = arith.mulf %34, %36 : vector<8x128xf32>
    %c1_i32 = arith.constant 1 : i32
    %38 = tpu.dynamic_rotate %25 by %c1_i32 dim 1 : vector<8x128xf32>, i32 -> vector<8x128xf32>
    %c3 = arith.constant 3 : index
    %c0_17 = arith.constant 0 : index
    %39 = vector.load %arg8[%c3, %c0_17] : memref<9x128xf32, #tpu.memory_space<vmem>>, vector<1x128xf32>
    %40 = vector.broadcast %39 : vector<1x128xf32> to vector<8x128xf32>
    %41 = arith.mulf %38, %40 : vector<8x128xf32>
    %c4 = arith.constant 4 : index
    %c0_18 = arith.constant 0 : index
    %42 = vector.load %arg8[%c4, %c0_18] : memref<9x128xf32, #tpu.memory_space<vmem>>, vector<1x128xf32>
    %43 = vector.broadcast %42 : vector<1x128xf32> to vector<8x128xf32>
    %44 = arith.mulf %25, %43 : vector<8x128xf32>
    %c127_i32 = arith.constant 127 : i32
    %45 = tpu.dynamic_rotate %25 by %c127_i32 dim 1 : vector<8x128xf32>, i32 -> vector<8x128xf32>
    %c5 = arith.constant 5 : index
    %c0_19 = arith.constant 0 : index
    %46 = vector.load %arg8[%c5, %c0_19] : memref<9x128xf32, #tpu.memory_space<vmem>>, vector<1x128xf32>
    %47 = vector.broadcast %46 : vector<1x128xf32> to vector<8x128xf32>
    %48 = arith.mulf %45, %47 : vector<8x128xf32>
    %c121_i32 = arith.constant 121 : i32
    %49 = tpu.dynamic_rotate %25 by %c121_i32 dim 1 : vector<8x128xf32>, i32 -> vector<8x128xf32>
    %c6 = arith.constant 6 : index
    %c0_20 = arith.constant 0 : index
    %50 = vector.load %arg8[%c6, %c0_20] : memref<9x128xf32, #tpu.memory_space<vmem>>, vector<1x128xf32>
    %51 = vector.broadcast %50 : vector<1x128xf32> to vector<8x128xf32>
    %52 = arith.mulf %49, %51 : vector<8x128xf32>
    %c120_i32 = arith.constant 120 : i32
    %53 = tpu.dynamic_rotate %25 by %c120_i32 dim 1 : vector<8x128xf32>, i32 -> vector<8x128xf32>
    %c7 = arith.constant 7 : index
    %c0_21 = arith.constant 0 : index
    %54 = vector.load %arg8[%c7, %c0_21] : memref<9x128xf32, #tpu.memory_space<vmem>>, vector<1x128xf32>
    %55 = vector.broadcast %54 : vector<1x128xf32> to vector<8x128xf32>
    %56 = arith.mulf %53, %55 : vector<8x128xf32>
    %c119_i32 = arith.constant 119 : i32
    %57 = tpu.dynamic_rotate %25 by %c119_i32 dim 1 : vector<8x128xf32>, i32 -> vector<8x128xf32>
    %c8 = arith.constant 8 : index
    %c0_22 = arith.constant 0 : index
    %58 = vector.load %arg8[%c8, %c0_22] : memref<9x128xf32, #tpu.memory_space<vmem>>, vector<1x128xf32>
    %59 = vector.broadcast %58 : vector<1x128xf32> to vector<8x128xf32>
    %60 = arith.mulf %57, %59 : vector<8x128xf32>
    %61 = tpu.concatenate %29, %33, %37, %41, %44, %48, %52, %56, %60 in 0 : vector<8x128xf32>, vector<8x128xf32>, vector<8x128xf32>, vector<8x128xf32>, vector<8x128xf32>, vector<8x128xf32>, vector<8x128xf32>, vector<8x128xf32>, vector<8x128xf32> -> vector<72x128xf32>
    %c0_23 = arith.constant 0 : index
    %c0_24 = arith.constant 0 : index
    %62 = vector.load %arg5[%c0_23, %c0_24] : memref<16x72xf32, #tpu.memory_space<vmem>>, vector<16x72xf32>
    %cst_25 = arith.constant dense<0.000000e+00> : vector<16x128xf32>
    %63 = tpu.matmul %62, %61, %cst_25 {dimension_numbers = #tpu.dot_dimension_numbers<[1], [0], [0], [1], [0, 0, 1, 1], [], []>} : vector<16x72xf32>, vector<72x128xf32>, vector<16x128xf32> -> vector<16x128xf32>
    %cst_26 = arith.constant dense<0.000000e+00> : vector<16xf32>
    %64 = vector.multi_reduction <add>, %63, %cst_26 [1] : vector<16x128xf32> to vector<16xf32>
    %65 = vector.shape_cast %64 : vector<16xf32> to vector<16x1xf32>
    %66 = vector.extract_strided_slice %65 {offsets = [0, 0], sizes = [4, 1], strides = [1, 1]} : vector<16x1xf32> to vector<4x1xf32>
    %67 = vector.extract_strided_slice %65 {offsets = [4, 0], sizes = [4, 1], strides = [1, 1]} : vector<16x1xf32> to vector<4x1xf32>
    %68 = arith.addf %66, %67 : vector<4x1xf32>
    %69 = vector.extract_strided_slice %65 {offsets = [8, 0], sizes = [4, 1], strides = [1, 1]} : vector<16x1xf32> to vector<4x1xf32>
    %70 = arith.addf %68, %69 : vector<4x1xf32>
    %71 = vector.extract_strided_slice %65 {offsets = [12, 0], sizes = [4, 1], strides = [1, 1]} : vector<16x1xf32> to vector<4x1xf32>
    %72 = arith.addf %70, %71 : vector<4x1xf32>
    %cst_27 = arith.constant 0.001953125 : f32
    %73 = vector.broadcast %cst_27 : f32 to vector<4x1xf32>
    %74 = arith.mulf %72, %73 : vector<4x1xf32>
    %75 = tpu.concatenate %74, %74, %74, %74 in 0 : vector<4x1xf32>, vector<4x1xf32>, vector<4x1xf32>, vector<4x1xf32> -> vector<16x1xf32>
    %76 = vector.broadcast %75 : vector<16x1xf32> to vector<16x128xf32>
    %77 = arith.subf %63, %76 : vector<16x128xf32>
    %78 = arith.mulf %77, %77 : vector<16x128xf32>
    %cst_28 = arith.constant dense<0.000000e+00> : vector<16xf32>
    %79 = vector.multi_reduction <add>, %78, %cst_28 [1] : vector<16x128xf32> to vector<16xf32>
    %80 = vector.shape_cast %79 : vector<16xf32> to vector<16x1xf32>
    %81 = vector.extract_strided_slice %80 {offsets = [0, 0], sizes = [4, 1], strides = [1, 1]} : vector<16x1xf32> to vector<4x1xf32>
    %82 = vector.extract_strided_slice %80 {offsets = [4, 0], sizes = [4, 1], strides = [1, 1]} : vector<16x1xf32> to vector<4x1xf32>
    %83 = arith.addf %81, %82 : vector<4x1xf32>
    %84 = vector.extract_strided_slice %80 {offsets = [8, 0], sizes = [4, 1], strides = [1, 1]} : vector<16x1xf32> to vector<4x1xf32>
    %85 = arith.addf %83, %84 : vector<4x1xf32>
    %86 = vector.extract_strided_slice %80 {offsets = [12, 0], sizes = [4, 1], strides = [1, 1]} : vector<16x1xf32> to vector<4x1xf32>
    %87 = arith.addf %85, %86 : vector<4x1xf32>
    %cst_29 = arith.constant 0.001953125 : f32
    %88 = vector.broadcast %cst_29 : f32 to vector<4x1xf32>
    %89 = arith.mulf %87, %88 : vector<4x1xf32>
    %c0_30 = arith.constant 0 : index
    %c0_31 = arith.constant 0 : index
    %90 = vector.load %arg6[%c0_30, %c0_31] : memref<4x1xf32, #tpu.memory_space<vmem>>, vector<4x1xf32>
    %cst_32 = arith.constant 9.99999974E-6 : f32
    %91 = vector.broadcast %cst_32 : f32 to vector<4x1xf32>
    %92 = arith.addf %89, %91 : vector<4x1xf32>
    %93 = math.rsqrt %92 : vector<4x1xf32>
    %94 = arith.mulf %90, %93 : vector<4x1xf32>
    %95 = tpu.concatenate %94, %94, %94, %94 in 0 : vector<4x1xf32>, vector<4x1xf32>, vector<4x1xf32>, vector<4x1xf32> -> vector<16x1xf32>
    %c0_33 = arith.constant 0 : index
    %c0_34 = arith.constant 0 : index
    %96 = vector.load %arg7[%c0_33, %c0_34] : memref<4x1xf32, #tpu.memory_space<vmem>>, vector<4x1xf32>
    %97 = tpu.concatenate %96, %96, %96, %96 in 0 : vector<4x1xf32>, vector<4x1xf32>, vector<4x1xf32>, vector<4x1xf32> -> vector<16x1xf32>
    %98 = vector.broadcast %95 : vector<16x1xf32> to vector<16x128xf32>
    %99 = arith.mulf %77, %98 : vector<16x128xf32>
    %100 = vector.broadcast %97 : vector<16x1xf32> to vector<16x128xf32>
    %101 = arith.addf %99, %100 : vector<16x128xf32>
    %cst_35 = arith.constant 0.000000e+00 : f32
    %102 = vector.broadcast %cst_35 : f32 to vector<16x128xf32>
    %103 = arith.cmpf oge, %101, %102 : vector<16x128xf32>
    %cst_36 = arith.constant 2.000000e-01 : f32
    %104 = vector.broadcast %cst_36 : f32 to vector<16x128xf32>
    %105 = arith.mulf %104, %101 : vector<16x128xf32>
    %106 = arith.select %103, %101, %105 : vector<16x128xi1>, vector<16x128xf32>
    %c0_37 = arith.constant 0 : index
    %c0_38 = arith.constant 0 : index
    %107 = vector.load %arg9[%c0_37, %c0_38] : memref<16x128xf32, #tpu.memory_space<vmem>>, vector<16x128xf32>
    tpu.vector_store %arg9[%c0_37, %c0_38], %106 {strides = array<i32>} : memref<16x128xf32, #tpu.memory_space<vmem>>, vector<16x128xf32>,
    return
  }
  func.func @transform_0(%arg0: i32) -> (i32, i32) {
    %c0_i32 = arith.constant 0 : i32
    %c0_i32_0 = arith.constant 0 : i32
    %c0_i32_1 = arith.constant 0 : i32
    return %c0_i32, %c0_i32_0 : i32, i32
  }
  func.func @transform_1(%arg0: i32) -> (i32, i32) {
    %c0_i32 = arith.constant 0 : i32
    %c0_i32_0 = arith.constant 0 : i32
    %c0_i32_1 = arith.constant 0 : i32
    return %c0_i32, %c0_i32_0 : i32, i32
  }
  func.func @transform_2(%arg0: i32) -> (i32, i32) {
    %c0_i32 = arith.constant 0 : i32
    %c0_i32_0 = arith.constant 0 : i32
    %c0_i32_1 = arith.constant 0 : i32
    return %c0_i32, %c0_i32_0 : i32, i32
  }
  func.func @transform_3(%arg0: i32) -> (i32, i32) {
    %c0_i32 = arith.constant 0 : i32
    %c0_i32_0 = arith.constant 0 : i32
    %c0_i32_1 = arith.constant 0 : i32
    return %c0_i32, %c0_i32_0 : i32, i32
  }
  func.func @transform_4(%arg0: i32) -> (i32, i32) {
    %c0_i32 = arith.constant 0 : i32
    %c0_i32_0 = arith.constant 0 : i32
    %c0_i32_1 = arith.constant 0 : i32
    return %c0_i32, %c0_i32_0 : i32, i32
  }
  func.func @transform_5(%arg0: i32) -> (i32, i32) {
    %c0_i32 = arith.constant 0 : i32
    %c0_i32_0 = arith.constant 0 : i32
    %c0_i32_1 = arith.constant 0 : i32
    return %c0_i32, %c0_i32_0 : i32, i32
  }
  func.func @transform_6(%arg0: i32) -> (i32, i32) {
    %c0_i32 = arith.constant 0 : i32
    %c0_i32_0 = arith.constant 0 : i32
    %c0_i32_1 = arith.constant 0 : i32
    return %c0_i32, %c0_i32_0 : i32, i32
  }
  func.func @transform_7(%arg0: i32) -> (i32, i32) {
    %c0_i32 = arith.constant 0 : i32
    %c0_i32_0 = arith.constant 0 : i32
    %c0_i32_1 = arith.constant 0 : i32
    return %c0_i32, %c0_i32_0 : i32, i32
  }
  func.func @transform_8(%arg0: i32) -> (i32, i32) {
    %c0_i32 = arith.constant 0 : i32
    %c0_i32_0 = arith.constant 0 : i32
    %c0_i32_1 = arith.constant 0 : i32
    return %c0_i32, %c0_i32_0 : i32, i32
  }
}

</mosaic_0001>

<bundles_post_ra>
// kernel: tile.38
= control target key start
LH: loop header
LB: loop body
LE: loop exit
PB: predicated region body
PF: predicated region fallthrough
CT: control target
= control target key end

     0   :  { %s22_s0 = inlined_call_operand.vmem [shape: f32[64], index: 0, kind: input, shape index: {}]   ;;  %s23_s1 = inlined_call_operand.vmem [shape: f32[2,64], index: 1, kind: output, shape index: {}]  }
   0x1   :  { %v4_v0 = vld [vmem:[%s22_s0] ss:$0 sm:$0xff] }
   0x2   :  { %5 = vst [vmem:[%s23_s1] sm:$0x3] %v4_v0 }

// kernel: tile.63
= control target key start
LH: loop header
LB: loop body
LE: loop exit
PB: predicated region body
PF: predicated region fallthrough
CT: control target
= control target key end

     0   :  { %vm7_vm0 = vcmask 523264   ;;  %vm13_vm1 = vcmask 1048064   ;;  %s39_s0 = inlined_call_operand.vmem [shape: f32[2,64], index: 0, kind: input, shape index: {}]   ;;  %s40_s1 = inlined_call_operand.vmem [shape: f32[1,128], index: 1, kind: output, shape index: {}]  }
   0x1   :  { %v4_v0 = vld [vmem:[%s39_s0] sm:$0x3]  ;;  %s22_s0 = smov 64  }
   0x2   :  { %5 = vst [vmem:[#allocation1] sm:$0x3] %v4_v0 }
   0x9   :  { %v10_v1 = vld [vmem:[#allocation1 + $0x1] sm:$0x1]   ;;  %v6_v2 = vld [vmem:[#allocation1] sm:$0x1]  }
   0xa   :  { %11 = vrot.lane.b32.xlu0 %v10_v1, %s22_s0  ;;  %8 = vst.msk [vmem:[#allocation0] sm:$0x1] %vm7_vm0, %v6_v2  }
  0x7c   :  { %v12_v3 = vpop.permute.xlu0 %11  }
  0x7d   :  { %14 = vst.msk [vmem:[#allocation0] sm:$0x1] %vm13_vm1, %v12_v3  }
  0x84   :  { %v17_v4 = vld [vmem:[#allocation0] sm:$0x1] }
  0x85   :  { %20 = vst [vmem:[%s40_s1] sm:$0x1] %v17_v4 }

// kernel: unet_block.1
= control target key start
LH: loop header
LB: loop body
LE: loop exit
PB: predicated region body
PF: predicated region fallthrough
CT: control target
= control target key end

     0   :  { %vm38_vm0 = vcmask 523264   ;;  %v309_v10 = vmov 128.0   ;;  %v310_v21 = vmov 0   ;;  %s311_s25 = smov 127   ;;  %s312_s26 = smov 121   ;;  %vm149_vm5 = vcmask 588800   ;;  %s445_s0 = inlined_call_operand.vmem [shape: f32[64,128], index: 0, kind: input, shape index: {}]   ;;  %s446_s1 = inlined_call_operand.vmem [shape: f32[8,64], index: 1, kind: input, shape index: {}]   ;;  %s447_s2 = inlined_call_operand.vmem [shape: f32[8,1], index: 2, kind: input, shape index: {}]   ;;  %s448_s7 = inlined_call_operand.vmem [shape: f32[9,128], index: 7, kind: input, shape index: {}]   ;;  %s449_s3 = inlined_call_operand.vmem [shape: f32[8,1], index: 3, kind: input, shape index: {}]   ;;  %s450_s4 = inlined_call_operand.vmem [shape: f32[16,72], index: 4, kind: input, shape index: {}]   ;;  %s451_s6 = inlined_call_operand.vmem [shape: f32[4,1], index: 6, kind: input, shape index: {}]   ;;  %s452_s5 = inlined_call_operand.vmem [shape: f32[4,1], index: 5, kind: input, shape index: {}]   ;;  %s453_s8 = inlined_call_operand.vmem [shape: f32[16,128], index: 8, kind: output, shape index: {}]  }
   0x1   :  { %v37_v0 = vld [vmem:[%s445_s0 + $0x38] sm:$0xff]  ;;  %v36_v1 = vld [vmem:[%s445_s0 + $0x30] sm:$0xff]  ;;  %v35_v2 = vld [vmem:[%s445_s0 + $0x28] sm:$0xff]  ;;  %303 = vrcp.f32 %v309_v10  ;;  %291 = vset.pattern.permute.xlu1 %v310_v21  ;;  %292 = vset.pattern.permute.xlu0 %v310_v21  ;;  %s314_s27 = smov 7   ;;  %s315_s28 = smov 120   ;;  %vm196_vm6 = vcmask 1043456  }
   0x2   :  { %50 = vmatpush.msra.mxu0 %v37_v0  ;;  %v34_v3 = vld [vmem:[%s445_s0 + $0x20] sm:$0xff]  ;;  %v33_v4 = vld [vmem:[%s445_s0 + $0x18] sm:$0xff]  ;;  %v32_v5 = vld [vmem:[%s445_s0 + $0x10] sm:$0xff]  ;;  %293 = vset.pattern.permute.xlu2 %v310_v21  ;;  %s316_s29 = smov 9   ;;  %s317_s30 = smov 1  }
   0x3   :  { %v31_v6 = vld [vmem:[%s445_s0 + $0x8] sm:$0xff]  ;;  %v30_v7 = vld [vmem:[%s445_s0] sm:$0xff] }
   0x4   :  { %51 = vmatpush.msra.mxu0 %v36_v1  ;;  %v29_v8 = vld [vmem:[%s446_s1] sm:$0xff]  ;;  %v294_v40 = vld [vmem:[%s448_s7 + $0x8] ss:$0 sm:$0xff] }
   0x5   :  { %v77_v30 = vld [vmem:[%s447_s2] sm:$0xff]  ;;  %s313_s2 = smov 119  }
   0x6   :  { %52 = vmatpush.msra.mxu0 %v35_v2  ;;  %v96_v34 = vld [vmem:[%s449_s3] sm:$0xff]  ;;  %s318_s3 = smov 8  }
   0x7   :  { %v304_v11 = vpop.eup %303  ;;  %v295_v43 = vld [vmem:[%s448_s7 + $0x7] ss:$0 sm:$0xff]  ;;  %v298_v46 = vld [vmem:[%s448_s7 + $0x6] ss:$0 sm:$0xff]  ;;  %v297_v48 = vld [vmem:[%s448_s7 + $0x5] ss:$0 sm:$0xff] }
   0x8   :  { %53 = vmatpush.msra.mxu0 %v34_v3  ;;  %v65_v12 = vmul.f32 128.0, %v304_v11  ;;  %vm69_vm1 = vweird.f32 %v304_v11  ;;  %v300_v52 = vld [vmem:[%s448_s7 + $0x4] ss:$0 sm:$0xff]  ;;  %v296_v53 = vld [vmem:[%s448_s7 + $0x3] ss:$0 sm:$0xff]  ;;  %v148_v3 = vld [vmem:[%s450_s4 + $0x8] sm:$0xff] }
   0x9   :  { %v301_v56 = vld [vmem:[%s448_s7 + $0x2] ss:$0 sm:$0xff]  ;;  %v299_v58 = vld [vmem:[%s448_s7 + $0x1] ss:$0 sm:$0xff]  ;;  %v302_v63 = vld [vmem:[%s448_s7] ss:$0 sm:$0xff] }
   0xa   :  { %54 = vmatpush.msra.mxu0 %v33_v4  ;;  %v66_v13 = vsub.f32 1.0, %v65_v12  ;;  %v147_v2 = vld [vmem:[%s450_s4] sm:$0xff] }
   0xc   :  { %55 = vmatpush.msra.mxu0 %v32_v5  ;;  %v67_v14 = vmul.f32 %v304_v11, %v66_v13 }
   0xe   :  { %56 = vmatpush.msra.mxu0 %v31_v6  ;;  %v68_v15 = vadd.f32 %v304_v11, %v67_v14 }
  0x10   :  { %57 = vmatpush.msra.mxu0 %v30_v7  ;;  %v70_v16 = vsel %vm69_vm1, %v304_v11, %v68_v15 }
  0x11   :  { %269 = vmatmul.msk.f32.vlgmr.msra.gmra.mxu0 %vm38_vm0, %v29_v8 }
  0x8e   :  { %v59_v9 = vpop.f32.mrf.mxu0 }
  0x8f   :  { %62 = vadd.xlane.f32.xlu0 %v59_v9 }
 0x102   :  { %v63_v17 = vpop.xlane.xlu0 %62 }
 0x103   :  { %v71_v18 = vmul.f32 %v70_v16, %v63_v17 }
 0x105   :  { %v72_v19 = vsub.f32 %v59_v9, %v71_v18 }
 0x107   :  { %v73_v20 = vmul.f32 %v72_v19, %v72_v19 }
 0x109   :  { %74 = vadd.xlane.f32.xlu0 %v73_v20 }
 0x17c   :  { %v75_v22 = vpop.xlane.xlu0 %74 }
 0x17d   :  { %v76_v23 = vmul.f32 %v75_v22, %v70_v16 }
 0x17f   :  { %v78_v24 = vadd.f32 1e-05, %v76_v23 }
 0x181   :  { %305 = vrsqrt.f32 %v78_v24  ;;  %vm85_vm3 = vweird.f32 %v78_v24 }
 0x187   :  { %v306_v25 = vpop.eup %305 }
 0x188   :  { %v80_v26 = vmul.f32 %v306_v25, %v78_v24  ;;  %vm86_vm2 = vweird.f32 %v306_v25 }
 0x189   :  { %vm87_vm4 = vmor %vm85_vm3, %vm86_vm2 }
 0x18a   :  { %v81_v27 = vmul.f32 %v306_v25, %v80_v26 }
 0x18c   :  { %v82_v28 = vmul.f32 0.5, %v81_v27 }
 0x18e   :  { %v83_v29 = vsub.f32 1.5, %v82_v28 }
 0x190   :  { %v84_v31 = vmul.f32 %v306_v25, %v83_v29 }
 0x192   :  { %v88_v32 = vsel %vm87_vm4, %v306_v25, %v84_v31  ;;  %v238_v25 = vld [vmem:[%s451_s6] sm:$0xf] }
 0x193   :  { %v89_v33 = vmul.f32 %v88_v32, %v77_v30  ;;  %v240_v28 = vrot.slane %v238_v25, 4 }
 0x195   :  { %92 = vperm.xlu1 %291, %v89_v33   ;;  %v242_v30 = vsel %vm196_vm6, %v238_v25, %v240_v28 }
 0x19d   :  { %99 = vperm.xlu1 %291, %v96_v34  }
 0x207   :  { %v93_v35 = vpop.permute.xlu1 %92 }
 0x208   :  { %v95_v36 = vmul.f32 %v93_v35, %v72_v19 }
 0x20f   :  { %v100_v37 = vpop.permute.xlu1 %99 }
 0x210   :  { %v102_v38 = vadd.f32 %v100_v37, %v95_v36 }
 0x212   :  { %v103_v39 = vmax.f32 %v102_v38, 0.0  ;;  %v221_v38 = vld [vmem:[%s452_s5] sm:$0xf] }
 0x214   :  { %127 = vrot.lane.b32.xlu1 %v103_v39, %s311_s25  ;;  %132 = vrot.lane.b32.xlu0 %v103_v39, %s312_s26  ;;  %v126_v55 = vmul.f32 %v300_v52, %v103_v39 }
 0x215   :  { %142 = vrot.lane.b32.xlu2 %v103_v39, %s313_s2 }
 0x21c   :  { %114 = vrot.lane.b32.xlu1 %v103_v39, %s314_s27 }
 0x21d   :  { %137 = vrot.lane.b32.xlu2 %v103_v39, %s315_s28 }
 0x224   :  { %104 = vrot.lane.b32.xlu1 %v103_v39, %s316_s29 }
 0x225   :  { %119 = vrot.lane.b32.xlu2 %v103_v39, %s317_s30 }
 0x22d   :  { %109 = vrot.lane.b32.xlu2 %v103_v39, %s318_s3 }
 0x26f   :  { %v143_v41 = vpop.permute.xlu2 %142 }
 0x270   :  { %v146_v42 = vmul.f32 %v294_v40, %v143_v41 }
 0x272   :  { %163 = vmatpush.msra.mxu1 %v146_v42  ;;  %272 = vmatpush.msra.mxu2 %v146_v42 }
 0x277   :  { %v138_v44 = vpop.permute.xlu2 %137 }
 0x278   :  { %v141_v45 = vmul.f32 %v295_v43, %v138_v44 }
 0x27a   :  { %164 = vmatpush.msra.mxu1 %v141_v45  ;;  %273 = vmatpush.msra.mxu2 %v141_v45 }
 0x27f   :  { %v120_v47 = vpop.permute.xlu2 %119 }
 0x280   :  { %v123_v57 = vmul.f32 %v296_v53, %v120_v47 }
 0x286   :  { %v128_v49 = vpop.permute.xlu1 %127  ;;  %v133_v50 = vpop.permute.xlu0 %132 }
 0x287   :  { %v136_v51 = vmul.f32 %v298_v46, %v133_v50  ;;  %v131_v54 = vmul.f32 %v297_v48, %v128_v49  ;;  %v110_v59 = vpop.permute.xlu2 %109 }
 0x288   :  { %v113_v62 = vmul.f32 %v299_v58, %v110_v59 }
 0x289   :  { %165 = vmatpush.msra.mxu1 %v136_v51  ;;  %274 = vmatpush.msra.mxu2 %v136_v51 }
 0x28b   :  { %166 = vmatpush.msra.mxu1 %v131_v54  ;;  %275 = vmatpush.msra.mxu2 %v131_v54 }
 0x28d   :  { %167 = vmatpush.msra.mxu1 %v126_v55  ;;  %276 = vmatpush.msra.mxu2 %v126_v55 }
 0x28e   :  { %v115_v60 = vpop.permute.xlu1 %114 }
 0x28f   :  { %v118_v61 = vmul.f32 %v301_v56, %v115_v60  ;;  %168 = vmatpush.msra.mxu1 %v123_v57  ;;  %277 = vmatpush.msra.mxu2 %v123_v57 }
 0x291   :  { %169 = vmatpush.msra.mxu1 %v118_v61  ;;  %278 = vmatpush.msra.mxu2 %v118_v61 }
 0x293   :  { %170 = vmatpush.msra.mxu1 %v113_v62  ;;  %279 = vmatpush.msra.mxu2 %v113_v62 }
 0x296   :  { %v105_v0 = vpop.permute.xlu1 %104 }
 0x297   :  { %v108_v1 = vmul.f32 %v302_v63, %v105_v0 }
 0x299   :  { %171 = vmatpush.msra.mxu1 %v108_v1  ;;  %280 = vmatpush.msra.mxu2 %v108_v1 }
 0x29a   :  { %270 = vmatmul.msk.f32.vlgmr.msra.gmra.mxu1 %vm149_vm5, %v147_v2  ;;  %271 = vmatmul.msk.f32.vlgmr.msra.gmra.mxu2 %vm149_vm5, %v148_v3 }
 0x317   :  { %v173_v4 = vpop.f32.mrf.mxu1 }
 0x318   :  { %179 = vadd.xlane.f32.xlu2 %v173_v4 }
 0x31d   :  { %v176_v5 = vpop.f32.mrf.mxu2 }
 0x31e   :  { %181 = vadd.xlane.f32.xlu0 %v176_v5 }
 0x38b   :  { %v180_v6 = vpop.xlane.xlu2 %179 }
 0x38c   :  { %v184_v7 = vrot.slane %v180_v6, 4 }
 0x38e   :  { %v186_v8 = vadd.f32 %v184_v7, %v180_v6 }
 0x391   :  { %v182_v9 = vpop.xlane.xlu0 %181 }
 0x392   :  { %v187_v10 = vadd.f32 %v186_v8, %v182_v9  ;;  %v189_v11 = vrot.slane %v182_v9, 4 }
 0x394   :  { %v191_v12 = vadd.f32 %v189_v11, %v187_v10 }
 0x396   :  { %v192_v13 = vmul.f32 0.001953125, %v191_v12 }
 0x398   :  { %v194_v14 = vrot.slane %v192_v13, 4 }
 0x39a   :  { %v197_v15 = vsel %vm196_vm6, %v192_v13, %v194_v14 }
 0x39b   :  { %200 = vperm.xlu1 %291, %v197_v15  }
 0x40d   :  { %v201_v16 = vpop.permute.xlu1 %200 }
 0x40e   :  { %v203_v17 = vsub.f32 %v173_v4, %v201_v16  ;;  %v204_v18 = vsub.f32 %v176_v5, %v201_v16 }
 0x410   :  { %v206_v19 = vmul.f32 %v204_v18, %v204_v18  ;;  %v205_v20 = vmul.f32 %v203_v17, %v203_v17 }
 0x412   :  { %209 = vadd.xlane.f32.xlu2 %v206_v19  ;;  %207 = vadd.xlane.f32.xlu1 %v205_v20 }
 0x42a   :  { %252 = vperm.xlu2 %293, %v242_v30  }
 0x485   :  { %v208_v21 = vpop.xlane.xlu1 %207  ;;  %v210_v23 = vpop.xlane.xlu2 %209 }
 0x486   :  { %v212_v22 = vrot.slane %v208_v21, 4  ;;  %v217_v26 = vrot.slane %v210_v23, 4 }
 0x488   :  { %v214_v24 = vadd.f32 %v212_v22, %v208_v21 }
 0x48a   :  { %v215_v27 = vadd.f32 %v214_v24, %v210_v23 }
 0x48c   :  { %v219_v29 = vadd.f32 %v217_v26, %v215_v27 }
 0x48d   :  { %v253_v45 = vpop.permute.xlu2 %252 }
 0x48e   :  { %v220_v31 = vmul.f32 0.001953125, %v219_v29 }
 0x490   :  { %v222_v32 = vadd.f32 1e-05, %v220_v31 }
 0x492   :  { %307 = vrsqrt.f32 %v222_v32  ;;  %vm229_vm8 = vweird.f32 %v222_v32 }
 0x498   :  { %v308_v33 = vpop.eup %307 }
 0x499   :  { %v224_v34 = vmul.f32 %v308_v33, %v222_v32  ;;  %vm230_vm7 = vweird.f32 %v308_v33 }
 0x49a   :  { %vm231_vm9 = vmor %vm229_vm8, %vm230_vm7 }
 0x49b   :  { %v225_v35 = vmul.f32 %v308_v33, %v224_v34 }
 0x49d   :  { %v226_v36 = vmul.f32 0.5, %v225_v35 }
 0x49f   :  { %v227_v37 = vsub.f32 1.5, %v226_v36 }
 0x4a1   :  { %v228_v39 = vmul.f32 %v308_v33, %v227_v37 }
 0x4a3   :  { %v232_v40 = vsel %vm231_vm9, %v308_v33, %v228_v39 }
 0x4a4   :  { %v233_v41 = vmul.f32 %v232_v40, %v221_v38 }
 0x4a6   :  { %v235_v42 = vrot.slane %v233_v41, 4 }
 0x4a8   :  { %v237_v43 = vsel %vm196_vm6, %v233_v41, %v235_v42 }
 0x4a9   :  { %245 = vperm.xlu0 %292, %v237_v43  }
 0x51b   :  { %v246_v44 = vpop.permute.xlu0 %245 }
 0x51c   :  { %v248_v46 = vmul.f32 %v246_v44, %v203_v17  ;;  %v249_v47 = vmul.f32 %v246_v44, %v204_v18 }
 0x51e   :  { %v255_v48 = vadd.f32 %v253_v45, %v248_v46  ;;  %v256_v49 = vadd.f32 %v253_v45, %v249_v47 }
 0x520   :  { %vm257_vm10 = vcmp.ge.f32.partialorder %v255_v48, 0.0  ;;  %vm258_vm11 = vcmp.ge.f32.partialorder %v256_v49, 0.0  ;;  %v259_v50 = vmul.f32 0.2, %v255_v48  ;;  %v260_v51 = vmul.f32 0.2, %v256_v49 }
 0x522   :  { %v261_v52 = vsel %vm257_vm10, %v255_v48, %v259_v50  ;;  %v262_v53 = vsel %vm258_vm11, %v256_v49, %v260_v51 }
 0x523   :  { %263 = vst [vmem:[%s453_s8] sm:$0xff] %v261_v52 }
 0x524   :  { %264 = vst [vmem:[%s453_s8 + $0x8] sm:$0xff] %v262_v53 }

</bundles_post_ra>
